<compile_context>
chip_gen: v6e
topology: v6e:2x2x1
jax: 0.10.0
libtpu: 0.0.40
codegen_flags: <defaults>
</compile_context>

<pallas_src>
import functools
import math

import jax
import jax.numpy as jnp
from jax.experimental import pallas as pl
from jax.experimental.pallas import tpu as pltpu

_PI_REF = 3.14159265  # same constant as the PyTorch module


def _cos_m_theta(cos, m):
    # Chebyshev polynomials T_m(cos) -- mirrors `self.mlambda` in the torch module.
    if m == 0:
        return jnp.ones_like(cos)
    if m == 1:
        return cos
    c2 = cos * cos
    if m == 2:
        return 2.0 * c2 - 1.0
    if m == 3:
        return (4.0 * c2 - 3.0) * cos
    if m == 4:
        return (8.0 * c2 - 8.0) * c2 + 1.0
    if m == 5:
        return ((16.0 * c2 - 20.0) * c2 + 5.0) * cos
    raise ValueError(f"unsupported margin m={m} (need 0 <= m <= 5)")


def _sphere_kernel(label_ref, x_ref, w_ref, out_ref, *wn_scratch,
                   m, inv_lamb, mxu_dtype):
    tb, tc = out_ref.shape
    ci = pl.program_id(0)                    # class-tile index (outer grid axis)

    x = x_ref[...].astype(jnp.float32)       # (TB, D)
    label = label_ref[...]                   # (TB, 1) int32

    # --- x norms: sum-of-squares on the VPU, sqrt/rsqrt on the (otherwise idle) EUP --
    sumsq_x = jnp.sum(x * x, axis=-1, keepdims=True)                       # (TB, 1)
    x_norm = jnp.sqrt(sumsq_x)                                             # torch.norm(input,2,1)
    # NOTE: zero-padded batch rows get inv_x == 1e12, but their output is 0*x_norm=0
    # and sliced away in the wrapper, so the large value never escapes.
    inv_x = jax.lax.rsqrt(jnp.maximum(sumsq_x, 1e-24))                     # F.normalize eps=1e-12

    def _normalized_weight():
        w = w_ref[...].astype(jnp.float32)                                  # (TC, D)
        inv_w = jax.lax.rsqrt(
            jnp.maximum(jnp.sum(w * w, axis=-1, keepdims=True), 1e-24))
        return (w * inv_w).astype(mxu_dtype)

    if wn_scratch:
        # Multiple batch tiles: normalize the weight tile once per class tile (its
        # block is only DMA'd once per class tile already) and reuse across batch
        # tiles.  Batch axis is "arbitrary", so bi == 0 fires once per class tile
        # on every core.
        wn_ref, = wn_scratch

        @pl.when(pl.program_id(1) == 0)
        def _():
            wn_ref[...] = _normalized_weight()

        wn = wn_ref[...]
    else:
        wn = _normalized_weight()

    # D-contraction straight to the MXU (no transpose of the weight tile); the x-side
    # normalization is folded into the matmul OUTPUT instead of scaling the operand.
    raw = jax.lax.dot_general(
        x.astype(mxu_dtype), wn,
        dimension_numbers=(((1,), (1,)), ((), ())),
        preferred_element_type=jnp.float32)                                 # (TB, TC)
    cos = jnp.clip(raw * inv_x, -1.0, 1.0)

    # --- margin math restricted to the label column ----------------------------------
    # One compare + one masked lane-reduce pulls the per-row cos at the label class;
    # the Chebyshev / k / phi work then runs on (TB, 1) vectors only.
    local_label = label - ci * tc                                           # (TB, 1)
    col = jax.lax.broadcasted_iota(jnp.int32, (tb, tc), 1)
    hit = col == local_label                                                # <=1 True/row
    cos_lab = jnp.sum(jnp.where(hit, cos, 0.0), axis=-1, keepdims=True)     # (TB, 1)

    cos_m_lab = _cos_m_theta(cos_lab, m)
    # k = floor(m*theta/pi_ref) by threshold counting (no acos):
    #   theta >= j*pi_ref/m  <=>  cos <= cos(j*pi_ref/m).
    # NOTE: may disagree with floor(m*acos(cos)/pi_ref) by 1 exactly at a threshold
    # because of f32 rounding; the /(1+lamb) blend keeps the effect ~1e-3 * ||x||.
    k = jnp.zeros(cos_lab.shape, dtype=jnp.int32)
    for j in range(1, m + 1):
        thr = math.cos(j * _PI_REF / m)
        k = k + (cos_lab <= jnp.float32(thr)).astype(jnp.int32)
    phi_lab = (jnp.where((k & 1) == 1, -cos_m_lab, cos_m_lab)
               - 2.0 * k.astype(jnp.float32))
    delta_lab = (phi_lab - cos_lab) * inv_lamb                              # (TB, 1)

    out_ref[...] = ((cos + jnp.where(hit, delta_lab, 0.0)) * x_norm).astype(out_ref.dtype)


def _round_up(n, mult):
    return ((n + mult - 1) // mult) * mult


def _vmem_capacity_bytes():
    """Per-core VMEM capacity; falls back to a conservative 64 MiB (v7x)."""
    try:
        info_fn = getattr(pltpu, "get_tpu_info", None)
        if info_fn is not None:
            info = info_fn()
            cap = getattr(info, "vmem_capacity_bytes", None)
            if cap:
                return int(cap)
    except Exception:
        pass
    return 64 * 1024 * 1024


def sphere_product(x, weight, label, *, m=4, it=1, base=1000.0, gamma=0.12,
                   power=1, lambda_min=5.0, block_b=None, block_c=None,
                   mxu_dtype=jnp.float32):
    """SphereProduct.forward.  `it` is the (post-increment) iteration counter.

    mxu_dtype=jnp.bfloat16 (opt-in) streams the weight matrix in bf16 and feeds the
    MXU in bf16 with f32 accumulation; cos deviates from the f32 reference by ~1e-3
    relative, so keep f32 where tight tolerances are required.
    """
    B, D = x.shape
    C, D2 = weight.shape
    assert D == D2, "feature dims of input and weight must match"
    assert 0 <= m <= 5, "margin m must be in [0, 5]"

    lamb = max(lambda_min, base * (1.0 + gamma * it) ** (-power))
    inv_lamb = 1.0 / (1.0 + lamb)            # compile-time constant (multiply, no divide)

    stream_bf16 = jnp.dtype(mxu_dtype) != jnp.dtype(jnp.float32)
    w_stream_dtype = jnp.dtype(mxu_dtype) if stream_bf16 else jnp.dtype(weight.dtype)
    w_item = w_stream_dtype.itemsize
    mxu_item = jnp.dtype(mxu_dtype).itemsize

    # --- tile sizing against the per-generation VMEM budget --------------------------
    cap = _vmem_capacity_bytes()
    budget = cap // 2                         # v5e/v6e: ~64 MiB, v7x: ~32 MiB
    Dl = _round_up(D, 128)                    # lane-padded feature width (layout bytes)
    Bp8 = _round_up(B, 8)
    Cp128 = _round_up(C, 128)

    def vmem_need(tb, tc):
        return (2 * tb * Dl * 4               # x tile (f32), double-buffered
                + 2 * tb * 128 * 4            # label column (lane-padded), double-buffered
                + 2 * tc * Dl * w_item        # weight tile, double-buffered
                + 2 * tb * tc * 4             # output tile, double-buffered
                + tc * Dl * mxu_item)         # normalized-weight scratch

    if block_b is None:
        # Batch-resident x tile whenever the double-buffered x block stays small: x
        # (and its norms) is then streamed/computed once, not once per class tile.
        TB = Bp8 if 2 * Bp8 * Dl * 4 <= 8 * 1024 * 1024 else min(Bp8, 512)
    else:
        TB = min(_round_up(block_b, 8), Bp8)
    TB = max(8, TB)

    if block_c is None:
        TC = min(Cp128, 2048)                 # use the VMEM headroom: fewer grid steps
    else:
        TC = min(_round_up(block_c, 128), Cp128)
    TC = max(128, TC)

    while TC > 128 and vmem_need(TB, TC) > budget:
        TC -= 128
    while TB > 8 and vmem_need(TB, TC) > budget:
        TB = max(8, _round_up(TB // 2, 8))

    Bp = _round_up(B, TB)
    Cp = _round_up(C, TC)
    b_tiles = Bp // TB
    c_tiles = Cp // TC
    cache_w = b_tiles > 1                     # reuse normalized weights across batch tiles

    # --- pad & cast the operands ------------------------------------------------------
    xp = x if Bp == B else jnp.pad(x, ((0, Bp - B), (0, 0)))
    wp = weight if Cp == C else jnp.pad(weight, ((0, Cp - C), (0, 0)))
    if jnp.dtype(wp.dtype) != w_stream_dtype:
        wp = wp.astype(w_stream_dtype)        # halves the dominant HBM stream (bf16 opt-in)
    lp = label.astype(jnp.int32).reshape(-1, 1)
    if Bp != B:
        lp = jnp.pad(lp, ((0, Bp - B), (0, 0)))
    # TODO(synk): labels stay as a (TB, 1) int32 VMEM block (the vector label-column
    # compare needs them in VMEM); SMEM scalar-prefetch would only give scalar reads.

    grid = (c_tiles, b_tiles)                 # class tiles OUTER -> weight DMA'd once/tile

    kernel = functools.partial(_sphere_kernel, m=m, inv_lamb=float(inv_lamb),
                               mxu_dtype=mxu_dtype)

    x_passes = 1 if b_tiles == 1 else c_tiles
    cost = pl.CostEstimate(
        flops=2 * Bp * Cp * D,
        transcendentals=2 * Bp * x_passes + Cp,          # x sqrt/rsqrt + weight rsqrt
        bytes_accessed=(4 * Bp * D * x_passes            # x re-read once per class tile
                        + w_item * Cp * D                # weight streamed once
                        + 4 * Bp * Cp                    # output write
                        + 4 * Bp * x_passes))            # label column

    out = pl.pallas_call(
        kernel,
        out_shape=jax.ShapeDtypeStruct((Bp, Cp), jnp.float32),
        grid=grid,
        in_specs=[
            pl.BlockSpec((TB, 1), lambda ci, bi: (bi, 0)),   # label column
            pl.BlockSpec((TB, D), lambda ci, bi: (bi, 0)),   # x tile
            pl.BlockSpec((TC, D), lambda ci, bi: (ci, 0)),   # weight tile (outer axis only)
        ],
        out_specs=pl.BlockSpec((TB, TC), lambda ci, bi: (bi, ci)),
        scratch_shapes=([pltpu.VMEM((TC, D), mxu_dtype)] if cache_w else []),
        compiler_params=pltpu.CompilerParams(
            dimension_semantics=("parallel", "arbitrary" if cache_w else "parallel"),
            vmem_limit_bytes=int(min(cap, 2 * vmem_need(TB, TC) + 8 * 1024 * 1024))),
        cost_estimate=cost,
    )(lp, xp, wp)

    if (Bp, Cp) != (B, C):
        out = out[:B, :C]
    return out


def _reference(x, weight, label, *, m=4, it=1):
    # Pure-JAX reference mirroring the PyTorch forward.
    mlambda = [
        lambda c: c ** 0,
        lambda c: c ** 1,
        lambda c: 2 * c ** 2 - 1,
        lambda c: 4 * c ** 3 - 3 * c,
        lambda c: 8 * c ** 4 - 8 * c ** 2 + 1,
        lambda c: 16 * c ** 5 - 20 * c ** 3 + 5 * c,
    ]
    lamb = max(5.0, 1000.0 * (1.0 + 0.12 * it) ** (-1))
    x_n = x / jnp.maximum(jnp.linalg.norm(x, axis=1, keepdims=True), 1e-12)
    w_n = weight / jnp.maximum(jnp.linalg.norm(weight, axis=1, keepdims=True), 1e-12)
    cos_theta = jnp.clip(x_n @ w_n.T, -1.0, 1.0)
    cos_m_theta = mlambda[m](cos_theta)
    theta = jnp.arccos(cos_theta)
    k = jnp.floor(m * theta / 3.14159265)
    phi_theta = (-1.0) ** k * cos_m_theta - 2 * k
    norm = jnp.linalg.norm(x, axis=1, keepdims=True)
    one_hot = jax.nn.one_hot(label, cos_theta.shape[1], dtype=jnp.float32)
    out = one_hot * (phi_theta - cos_theta) / (1 + lamb) + cos_theta
    return out * norm


if __name__ == "__main__":
    key = jax.random.PRNGKey(0)
    k1x, k1w, k1l, k2x, k2w, k2l, k3x, k3w, k3l = jax.random.split(key, 9)
    m = 4

    # --- case 1: module's own small shapes, auto tiles (single tile, padded C) -------
    B, D, C = 8, 32, 16
    x = jax.random.normal(k1x, (B, D), dtype=jnp.float32)
    bound = math.sqrt(6.0 / (D + C))            # xavier_uniform
    w = jax.random.uniform(k1w, (C, D), dtype=jnp.float32, minval=-bound, maxval=bound)
    label = jax.random.randint(k1l, (B,), 0, C, dtype=jnp.int32)

    out = jax.block_until_ready(sphere_product(x, w, label, m=m, it=1))
    ref = _reference(x, w, label, m=m, it=1)
    assert out.shape == (B, C)
    assert jnp.allclose(out, ref, atol=1e-3, rtol=1e-3), float(jnp.abs(out - ref).max())

    # --- case 2: forced multi-tile grid (exercises weight-scratch caching path) -------
    B2, D2, C2 = 16, 64, 200
    x2 = jax.random.normal(k2x, (B2, D2), dtype=jnp.float32)
    bound2 = math.sqrt(6.0 / (D2 + C2))
    w2 = jax.random.uniform(k2w, (C2, D2), dtype=jnp.float32, minval=-bound2, maxval=bound2)
    label2 = jax.random.randint(k2l, (B2,), 0, C2, dtype=jnp.int32)

    out2 = jax.block_until_ready(
        sphere_product(x2, w2, label2, m=m, it=3, block_b=8, block_c=128))
    ref2 = _reference(x2, w2, label2, m=m, it=3)
    assert out2.shape == (B2, C2)
    assert jnp.allclose(out2, ref2, atol=1e-3, rtol=1e-3), float(jnp.abs(out2 - ref2).max())

    # --- case 3: bf16 weight-streaming / bf16 MXU path (opt-in, loose tolerance) ------
    B3, D3, C3 = 32, 128, 300
    x3 = jax.random.normal(k3x, (B3, D3), dtype=jnp.float32)
    bound3 = math.sqrt(6.0 / (D3 + C3))
    w3 = jax.random.uniform(k3w, (C3, D3), dtype=jnp.float32, minval=-bound3, maxval=bound3)
    label3 = jax.random.randint(k3l, (B3,), 0, C3, dtype=jnp.int32)

    out3 = jax.block_until_ready(
        sphere_product(x3, w3, label3, m=m, it=2, mxu_dtype=jnp.bfloat16))
    ref3 = _reference(x3, w3, label3, m=m, it=2)
    assert out3.shape == (B3, C3)
    assert bool(jnp.all(jnp.isfinite(out3)))
    assert float(jnp.max(jnp.abs(out3 - ref3))) < 0.25   # bf16 operands, f32 accumulate

    print("KERNEL_OK")
</pallas_src>

<mosaic_0001>
module attributes {stable_mosaic.version = 11 : i64} {
  func.func @_sphere_kernel(%arg0: i32, %arg1: i32, %arg2: memref<8x1xi32, #tpu.memory_space<vmem>>, %arg3: memref<8x32xf32, #tpu.memory_space<vmem>>, %arg4: memref<128x32xf32, #tpu.memory_space<vmem>>, %arg5: memref<8x128xf32, #tpu.memory_space<vmem>>) attributes {dimension_semantics = [#tpu.dimension_semantics<parallel>, #tpu.dimension_semantics<parallel>], iteration_bounds = array<i64: 1, 1>, scalar_prefetch = 0 : i64, scratch_operands = 0 : i64, tpu.core_type = #tpu.core_type<tc>, window_params = [{transform_indices = @transform_0, window_bounds = array<i64: 8, 1>}, {transform_indices = @transform_1, window_bounds = array<i64: 8, 32>}, {transform_indices = @transform_2, window_bounds = array<i64: 128, 32>}, {transform_indices = @transform_3, window_bounds = array<i64: 8, 128>}]} {
    %c0 = arith.constant 0 : index
    %c0_0 = arith.constant 0 : index
    %0 = vector.load %arg3[%c0, %c0_0] : memref<8x32xf32, #tpu.memory_space<vmem>>, vector<8x32xf32>
    %c0_1 = arith.constant 0 : index
    %c0_2 = arith.constant 0 : index
    %1 = vector.load %arg2[%c0_1, %c0_2] : memref<8x1xi32, #tpu.memory_space<vmem>>, vector<8x1xi32>
    %2 = arith.mulf %0, %0 : vector<8x32xf32>
    %cst = arith.constant dense<0.000000e+00> : vector<8xf32>
    %3 = vector.multi_reduction <add>, %2, %cst [1] : vector<8x32xf32> to vector<8xf32>
    %4 = vector.shape_cast %3 : vector<8xf32> to vector<8x1xf32>
    %5 = math.sqrt %4 : vector<8x1xf32>
    %cst_3 = arith.constant 1.000000e-24 : f32
    %6 = vector.broadcast %cst_3 : f32 to vector<8x1xf32>
    %7 = arith.maximumf %4, %6 : vector<8x1xf32>
    %8 = math.rsqrt %7 : vector<8x1xf32>
    %c0_4 = arith.constant 0 : index
    %c0_5 = arith.constant 0 : index
    %9 = vector.load %arg4[%c0_4, %c0_5] : memref<128x32xf32, #tpu.memory_space<vmem>>, vector<128x32xf32>
    %10 = arith.mulf %9, %9 : vector<128x32xf32>
    %cst_6 = arith.constant dense<0.000000e+00> : vector<128xf32>
    %11 = vector.multi_reduction <add>, %10, %cst_6 [1] : vector<128x32xf32> to vector<128xf32>
    %12 = vector.shape_cast %11 : vector<128xf32> to vector<128x1xf32>
    %cst_7 = arith.constant 1.000000e-24 : f32
    %13 = vector.broadcast %cst_7 : f32 to vector<128x1xf32>
    %14 = arith.maximumf %12, %13 : vector<128x1xf32>
    %15 = math.rsqrt %14 : vector<128x1xf32>
    %16 = vector.broadcast %15 : vector<128x1xf32> to vector<128x32xf32>
    %17 = arith.mulf %9, %16 : vector<128x32xf32>
    %cst_8 = arith.constant dense<0.000000e+00> : vector<8x128xf32>
    %18 = tpu.matmul %0, %17, %cst_8 {dimension_numbers = #tpu.dot_dimension_numbers<[1], [1], [0], [0], [0, 0, 1, 0], [], []>} : vector<8x32xf32>, vector<128x32xf32>, vector<8x128xf32> -> vector<8x128xf32>
    %19 = vector.broadcast %8 : vector<8x1xf32> to vector<8x128xf32>
    %20 = arith.mulf %18, %19 : vector<8x128xf32>
    %cst_9 = arith.constant -1.000000e+00 : f32
    %cst_10 = arith.constant 1.000000e+00 : f32
    %21 = vector.broadcast %cst_9 : f32 to vector<8x128xf32>
    %22 = arith.maximumf %21, %20 : vector<8x128xf32>
    %23 = vector.broadcast %cst_10 : f32 to vector<8x128xf32>
    %24 = arith.minimumf %23, %22 : vector<8x128xf32>
    %c128_i32 = arith.constant 128 : i32
    %25 = arith.muli %arg0, %c128_i32 : i32
    %26 = vector.broadcast %25 : i32 to vector<8x1xi32>
    %27 = arith.subi %1, %26 : vector<8x1xi32>
    %28 = tpu.iota {dimensions = array<i32: 1>} : vector<8x128xi32>
    %29 = vector.broadcast %27 : vector<8x1xi32> to vector<8x128xi32>
    %30 = arith.cmpi eq, %28, %29 : vector<8x128xi32>
    %cst_11 = arith.constant 0.000000e+00 : f32
    %31 = vector.broadcast %cst_11 : f32 to vector<8x128xf32>
    %32 = arith.select %30, %24, %31 : vector<8x128xi1>, vector<8x128xf32>
    %cst_12 = arith.constant dense<0.000000e+00> : vector<8xf32>
    %33 = vector.multi_reduction <add>, %32, %cst_12 [1] : vector<8x128xf32> to vector<8xf32>
    %34 = vector.shape_cast %33 : vector<8xf32> to vector<8x1xf32>
    %35 = arith.mulf %34, %34 : vector<8x1xf32>
    %cst_13 = arith.constant 8.000000e+00 : f32
    %36 = vector.broadcast %cst_13 : f32 to vector<8x1xf32>
    %37 = arith.mulf %36, %35 : vector<8x1xf32>
    %cst_14 = arith.constant 8.000000e+00 : f32
    %38 = vector.broadcast %cst_14 : f32 to vector<8x1xf32>
    %39 = arith.subf %37, %38 : vector<8x1xf32>
    %40 = arith.mulf %39, %35 : vector<8x1xf32>
    %cst_15 = arith.constant 1.000000e+00 : f32
    %41 = vector.broadcast %cst_15 : f32 to vector<8x1xf32>
    %42 = arith.addf %40, %41 : vector<8x1xf32>
    %c0_i32 = arith.constant 0 : i32
    %43 = vector.broadcast %c0_i32 : i32 to vector<8x1xi32>
    %cst_16 = arith.constant 0.707106769 : f32
    %44 = vector.broadcast %cst_16 : f32 to vector<8x1xf32>
    %45 = arith.cmpf ole, %34, %44 : vector<8x1xf32>
    %46 = arith.extui %45 : vector<8x1xi1> to vector<8x1xi32>
    %47 = arith.addi %43, %46 : vector<8x1xi32>
    %cst_17 = arith.constant 1.79489656E-9 : f32
    %48 = vector.broadcast %cst_17 : f32 to vector<8x1xf32>
    %49 = arith.cmpf ole, %34, %48 : vector<8x1xf32>
    %50 = arith.extui %49 : vector<8x1xi1> to vector<8x1xi32>
    %51 = arith.addi %47, %50 : vector<8x1xi32>
    %cst_18 = arith.constant -0.707106769 : f32
    %52 = vector.broadcast %cst_18 : f32 to vector<8x1xf32>
    %53 = arith.cmpf ole, %34, %52 : vector<8x1xf32>
    %54 = arith.extui %53 : vector<8x1xi1> to vector<8x1xi32>
    %55 = arith.addi %51, %54 : vector<8x1xi32>
    %cst_19 = arith.constant -1.000000e+00 : f32
    %56 = vector.broadcast %cst_19 : f32 to vector<8x1xf32>
    %57 = arith.cmpf ole, %34, %56 : vector<8x1xf32>
    %58 = arith.extui %57 : vector<8x1xi1> to vector<8x1xi32>
    %59 = arith.addi %55, %58 : vector<8x1xi32>
    %c1_i32 = arith.constant 1 : i32
    %60 = vector.broadcast %c1_i32 : i32 to vector<8x1xi32>
    %61 = arith.andi %59, %60 : vector<8x1xi32>
    %c1_i32_20 = arith.constant 1 : i32
    %62 = vector.broadcast %c1_i32_20 : i32 to vector<8x1xi32>
    %63 = arith.cmpi eq, %61, %62 : vector<8x1xi32>
    %cst_21 = arith.constant 0.000000e+00 : f32
    %64 = vector.broadcast %cst_21 : f32 to vector<8x1xf32>
    %65 = arith.subf %64, %42 : vector<8x1xf32>
    %66 = arith.select %63, %65, %42 : vector<8x1xi1>, vector<8x1xf32>
    %67 = arith.sitofp %59 : vector<8x1xi32> to vector<8x1xf32>
    %cst_22 = arith.constant 2.000000e+00 : f32
    %68 = vector.broadcast %cst_22 : f32 to vector<8x1xf32>
    %69 = arith.mulf %68, %67 : vector<8x1xf32>
    %70 = arith.subf %66, %69 : vector<8x1xf32>
    %71 = arith.subf %70, %34 : vector<8x1xf32>
    %cst_23 = arith.constant 0.00111874705 : f32
    %72 = vector.broadcast %cst_23 : f32 to vector<8x1xf32>
    %73 = arith.mulf %71, %72 : vector<8x1xf32>
    %cst_24 = arith.constant 0.000000e+00 : f32
    %74 = vector.shape_cast %73 : vector<8x1xf32> to vector<8x1xf32>
    %75 = vector.broadcast %74 : vector<8x1xf32> to vector<8x128xf32>
    %76 = vector.broadcast %cst_24 : f32 to vector<8x128xf32>
    %77 = arith.select %30, %75, %76 : vector<8x128xi1>, vector<8x128xf32>
    %78 = arith.addf %24, %77 : vector<8x128xf32>
    %79 = vector.broadcast %5 : vector<8x1xf32> to vector<8x128xf32>
    %80 = arith.mulf %78, %79 : vector<8x128xf32>
    %c0_25 = arith.constant 0 : index
    %c0_26 = arith.constant 0 : index
    %81 = vector.load %arg5[%c0_25, %c0_26] : memref<8x128xf32, #tpu.memory_space<vmem>>, vector<8x128xf32>
    tpu.vector_store %arg5[%c0_25, %c0_26], %80 {strides = array<i32>} : memref<8x128xf32, #tpu.memory_space<vmem>>, vector<8x128xf32>,
    return
  }
  func.func @transform_0(%arg0: i32, %arg1: i32) -> (i32, i32) {
    %c0_i32 = arith.constant 0 : i32
    %c0_i32_0 = arith.constant 0 : i32
    return %arg1, %c0_i32 : i32, i32
  }
  func.func @transform_1(%arg0: i32, %arg1: i32) -> (i32, i32) {
    %c0_i32 = arith.constant 0 : i32
    %c0_i32_0 = arith.constant 0 : i32
    return %arg1, %c0_i32 : i32, i32
  }
  func.func @transform_2(%arg0: i32, %arg1: i32) -> (i32, i32) {
    %c0_i32 = arith.constant 0 : i32
    %c0_i32_0 = arith.constant 0 : i32
    return %arg0, %c0_i32 : i32, i32
  }
  func.func @transform_3(%arg0: i32, %arg1: i32) -> (i32, i32) {
    %c0_i32 = arith.constant 0 : i32
    return %arg1, %arg0 : i32, i32
  }
}

</mosaic_0001>

<bundles_post_ra>
// kernel: tpu_custom_call.1
= control target key start
LH: loop header
LB: loop body
LE: loop exit
PB: predicated region body
PF: predicated region fallthrough
CT: control target
= control target key end

     0   :  { %vm18_vm0 = vcmask 261120   ;;  %s698_s0 = inlined_call_operand.vmem [shape: s32[8,1], index: 0, kind: input, shape index: {}]   ;;  %s699_s1 = inlined_call_operand.vmem [shape: f32[8,32], index: 1, kind: input, shape index: {}]   ;;  %s700_s2 = inlined_call_operand.vmem [shape: f32[128,32], index: 2, kind: input, shape index: {}]   ;;  %s701_s3 = inlined_call_operand.hbm [shape: f32[8,128], index: 3, kind: output, shape index: {}]  }
   0x1   :  { %v500_v0 = vld [vmem:[%s700_s2 + $0x78] sm:$0xff]  ;;  %v505_v1 = vld [vmem:[%s700_s2 + $0x70] sm:$0xff]  ;;  %v510_v2 = vld [vmem:[%s700_s2 + $0x68] sm:$0xff] }
   0x2   :  { %v62_v3 = vmul.f32 %v500_v0, %v500_v0  ;;  %v61_v4 = vmul.f32 %v505_v1, %v505_v1  ;;  %v60_v5 = vmul.f32 %v510_v2, %v510_v2  ;;  %v521_v6 = vld [vmem:[%s700_s2 + $0x60] sm:$0xff]  ;;  %v528_v8 = vld [vmem:[%s700_s2 + $0x58] sm:$0xff]  ;;  %v533_v9 = vld [vmem:[%s700_s2 + $0x50] sm:$0xff] }
   0x3   :  { %v59_v7 = vmul.f32 %v521_v6, %v521_v6  ;;  %v58_v14 = vmul.f32 %v528_v8, %v528_v8  ;;  %v57_v15 = vmul.f32 %v533_v9, %v533_v9 }
   0x4   :  { %v108_v10 = vsel %vm18_vm0, %v62_v3, 0.0  ;;  %v102_v11 = vsel %vm18_vm0, %v60_v5, 0.0  ;;  %v105_v12 = vsel %vm18_vm0, %v61_v4, 0.0 }
   0x5   :  { %109 = vadd.xlane.f32.xlu0 %v108_v10  ;;  %103 = vadd.xlane.f32.xlu1 %v102_v11  ;;  %v99_v13 = vsel %vm18_vm0, %v59_v7, 0.0 }
   0x6   :  { %8 = vsyncpa [#allocation3], 0  ;;  %v546_v16 = vld [vmem:[%s700_s2 + $0x48] sm:$0xff]  ;;  %v551_v17 = vld [vmem:[%s700_s2 + $0x40] sm:$0xff]  ;;  %v96_v18 = vsel %vm18_vm0, %v58_v14, 0.0  ;;  %v93_v19 = vsel %vm18_vm0, %v57_v15, 0.0 }
   0x7   :  { %v56_v20 = vmul.f32 %v546_v16, %v546_v16  ;;  %v55_v21 = vmul.f32 %v551_v17, %v551_v17  ;;  %v562_v22 = vld [vmem:[%s700_s2 + $0x38] sm:$0xff]  ;;  %v567_v23 = vld [vmem:[%s700_s2 + $0x30] sm:$0xff]  ;;  %v578_v28 = vld [vmem:[%s700_s2 + $0x28] sm:$0xff]  ;;  %v473_v46 = vmov 0.0   ;;  %vm474_vm1 = vmmov 0  }
   0x8   :  { %v54_v26 = vmul.f32 %v562_v22, %v562_v22  ;;  %v53_v27 = vmul.f32 %v567_v23, %v567_v23  ;;  %v583_v29 = vld [vmem:[%s700_s2 + $0x20] sm:$0xff]  ;;  %v52_v32 = vmul.f32 %v578_v28, %v578_v28  ;;  %v594_v34 = vld [vmem:[%s700_s2 + $0x18] sm:$0xff]  ;;  %v599_v35 = vld [vmem:[%s700_s2 + $0x10] sm:$0xff]  ;;  %374 = vmatprep.subr.mxu0 %v473_v46  ;;  %406 = vmatprep.mubr.msk.f32.mxu0 %vm474_vm1, %v473_v46  ;;  %v475_v52 = vmov 0  }
   0x9   :  { %106 = vadd.xlane.f32.xlu0 %v105_v12  ;;  %100 = vadd.xlane.f32.xlu1 %v99_v13  ;;  %v90_v24 = vsel %vm18_vm0, %v56_v20, 0.0  ;;  %v87_v25 = vsel %vm18_vm0, %v55_v21, 0.0  ;;  %v51_v33 = vmul.f32 %v583_v29, %v583_v29  ;;  %v50_v38 = vmul.f32 %v594_v34, %v594_v34  ;;  %v610_v40 = vld [vmem:[%s700_s2 + $0x8] sm:$0xff]  ;;  %v615_v41 = vld [vmem:[%s700_s2] sm:$0xff] }
   0xa   :  { %v84_v30 = vsel %vm18_vm0, %v54_v26, 0.0  ;;  %v81_v31 = vsel %vm18_vm0, %v53_v27, 0.0  ;;  %v78_v36 = vsel %vm18_vm0, %v52_v32, 0.0  ;;  %v49_v39 = vmul.f32 %v599_v35, %v599_v35  ;;  %v630_v49 = vld [vmem:[%s699_s1] sm:$0xff]  ;;  %413 = vset.pattern.permute.xlu1 %v475_v52  ;;  %414 = vset.pattern.permute.xlu0 %v475_v52 }
   0xb   :  { %v75_v37 = vsel %vm18_vm0, %v51_v33, 0.0  ;;  %v72_v42 = vsel %vm18_vm0, %v50_v38, 0.0  ;;  %v48_v44 = vmul.f32 %v610_v40, %v610_v40  ;;  %v47_v45 = vmul.f32 %v615_v41, %v615_v41  ;;  %v16_v51 = vld [vmem:[%s698_s0] sm:$0xff]  ;;  %s476_s0 = smov [#allocation2]  }
   0xc   :  { %v69_v43 = vsel %vm18_vm0, %v49_v39, 0.0  ;;  %v17_v50 = vmul.f32 %v630_v49, %v630_v49  ;;  %s330_s1 = sshll.u32 %s476_s0, 4  ;;  %s331_s1 = int_to_ptr.vmem [resolvable:$true] %s330_s1 }
   0xd   :  { %97 = vadd.xlane.f32.xlu0 %v96_v18  ;;  %94 = vadd.xlane.f32.xlu1 %v93_v19  ;;  %v66_v47 = vsel %vm18_vm0, %v48_v44, 0.0  ;;  %v63_v48 = vsel %vm18_vm0, %v47_v45, 0.0  ;;  %s451_s20 = scalar_lea.vmem %s331_s1, 128  ;;  %p456_p1 = scmp.lt.s32.totalorder %s331_s1, %s331_s1 }
   0xe   :  { %v19_v53 = vsel %vm18_vm0, %v17_v50, 0.0  ;;  %p452_p0 = scmp.ne.s32.totalorder %s331_s1, %s451_s20  ;;  %p457_p2 = scmp.lt.s32.totalorder %s451_s20, %s451_s20 }
  0x10   :  { %p458_p3 = por %p457_p2, %p456_p1 }
  0x11   :  { %91 = vadd.xlane.f32.xlu0 %v90_v24  ;;  %88 = vadd.xlane.f32.xlu1 %v87_v25 }
  0x12   :  { %p459_p4 = pnand %p458_p3, %p452_p0 }
  0x15   :  { %85 = vadd.xlane.f32.xlu0 %v84_v30  ;;  %82 = vadd.xlane.f32.xlu1 %v81_v31 }
  0x19   :  { %79 = vadd.xlane.f32.xlu0 %v78_v36  ;;  %76 = vadd.xlane.f32.xlu1 %v75_v37 }
  0x1d   :  { %73 = vadd.xlane.f32.xlu0 %v72_v42  ;;  %70 = vadd.xlane.f32.xlu1 %v69_v43 }
  0x21   :  { %67 = vadd.xlane.f32.xlu0 %v66_v47  ;;  %64 = vadd.xlane.f32.xlu1 %v63_v48 }
  0x25   :  { %20 = vadd.xlane.f32.xlu0 %v19_v53 }
  0x32   :  { %289 = vperm.xlu1 %413, %v16_v51  }
  0x8e   :  { %v110_v54 = vpop.xlane.xlu0 %109  ;;  %v104_v55 = vpop.xlane.xlu1 %103 }
  0x8f   :  { %v126_v56 = vmax.f32 %v110_v54, 1e-24  ;;  %v124_v57 = vmax.f32 %v104_v55, 1e-24 }
  0x91   :  { %415 = vrsqrt.f32 %v126_v56 }
  0x92   :  { %v107_v58 = vpop.xlane.xlu0 %106  ;;  %v101_v59 = vpop.xlane.xlu1 %100  ;;  %417 = vrsqrt.f32 %v124_v57 }
  0x93   :  { %v125_v60 = vmax.f32 %v107_v58, 1e-24  ;;  %v123_v61 = vmax.f32 %v101_v59, 1e-24 }
  0x95   :  { %419 = vrsqrt.f32 %v125_v60 }
  0x96   :  { %v98_v62 = vpop.xlane.xlu0 %97  ;;  %421 = vrsqrt.f32 %v123_v61  ;;  %v95_v3 = vpop.xlane.xlu1 %94  ;;  %v286_v61 = vlaneseq }
  0x97   :  { %v122_v63 = vmax.f32 %v98_v62, 1e-24  ;;  %v121_v4 = vmax.f32 %v95_v3, 1e-24 }
  0x99   :  { %423 = vrsqrt.f32 %v122_v63 }
  0x9a   :  { %v92_v7 = vpop.xlane.xlu0 %91  ;;  %425 = vrsqrt.f32 %v121_v4  ;;  %v89_v14 = vpop.xlane.xlu1 %88 }
  0x9b   :  { %v120_v12 = vmax.f32 %v92_v7, 1e-24  ;;  %v119_v19 = vmax.f32 %v89_v14, 1e-24 }
  0x9d   :  { %427 = vrsqrt.f32 %v120_v12 }
  0x9e   :  { %v416_v5 = vpop.eup %415  ;;  %429 = vrsqrt.f32 %v119_v19 }
  0x9f   :  { %v158_v10 = vmul.f32 %v416_v5, %v500_v0  ;;  %v418_v11 = vpop.eup %417  ;;  %v86_v0 = vpop.xlane.xlu0 %85 }
  0xa0   :  { %v156_v18 = vmul.f32 %v418_v11, %v510_v2  ;;  %v118_v24 = vmax.f32 %v86_v0, 1e-24 }
  0xa1   :  { %375 = vmatpush3.xpose.msk.msra.mxu0 %vm18_vm0, %v158_v10 }
  0xa2   :  { %v420_v13 = vpop.eup %419  ;;  %376 = vmatprep.subr.mxu0 %v473_v46  ;;  %431 = vrsqrt.f32 %v118_v24 }
  0xa3   :  { %v157_v15 = vmul.f32 %v420_v13, %v505_v1  ;;  %v422_v20 = vpop.eup %421  ;;  %v83_v1 = vpop.xlane.xlu1 %82 }
  0xa4   :  { %v155_v21 = vmul.f32 %v422_v20, %v521_v6  ;;  %v117_v26 = vmax.f32 %v83_v1, 1e-24  ;;  %v80_v30 = vpop.xlane.xlu0 %79 }
  0xa5   :  { %377 = vmatpush3.xpose.msk.msra.mxu0 %vm18_vm0, %v157_v15  ;;  %v116_v31 = vmax.f32 %v80_v30, 1e-24 }
  0xa6   :  { %378 = vmatprep.subr.mxu0 %v473_v46  ;;  %v424_v25 = vpop.eup %423  ;;  %433 = vrsqrt.f32 %v117_v26 }
  0xa7   :  { %v154_v2 = vmul.f32 %v424_v25, %v528_v8  ;;  %v426_v27 = vpop.eup %425  ;;  %v77_v33 = vpop.xlane.xlu1 %76  ;;  %435 = vrsqrt.f32 %v116_v31 }
  0xa8   :  { %v153_v6 = vmul.f32 %v426_v27, %v533_v9  ;;  %v115_v36 = vmax.f32 %v77_v33, 1e-24  ;;  %v74_v38 = vpop.xlane.xlu0 %73 }
  0xa9   :  { %379 = vmatpush3.xpose.msk.msra.mxu0 %vm18_vm0, %v156_v18  ;;  %v114_v39 = vmax.f32 %v74_v38, 1e-24 }
  0xaa   :  { %380 = vmatprep.subr.mxu0 %v473_v46  ;;  %v428_v32 = vpop.eup %427  ;;  %437 = vrsqrt.f32 %v115_v36 }
  0xab   :  { %v152_v8 = vmul.f32 %v428_v32, %v546_v16  ;;  %v430_v37 = vpop.eup %429  ;;  %v71_v43 = vpop.xlane.xlu1 %70  ;;  %439 = vrsqrt.f32 %v114_v39 }
  0xac   :  { %v151_v9 = vmul.f32 %v430_v37, %v551_v17  ;;  %v113_v44 = vmax.f32 %v71_v43, 1e-24  ;;  %v68_v47 = vpop.xlane.xlu0 %67 }
  0xad   :  { %381 = vmatpush3.xpose.msk.msra.mxu0 %vm18_vm0, %v155_v21  ;;  %v112_v48 = vmax.f32 %v68_v47, 1e-24 }
  0xae   :  { %382 = vmatprep.subr.mxu0 %v473_v46  ;;  %441 = vrsqrt.f32 %v113_v44 }
  0xaf   :  { %v432_v42 = vpop.eup %431  ;;  %v65_v51 = vpop.xlane.xlu1 %64  ;;  %443 = vrsqrt.f32 %v112_v48 }
  0xb0   :  { %v150_v16 = vmul.f32 %v432_v42, %v562_v22  ;;  %v111_v53 = vmax.f32 %v65_v51, 1e-24 }
  0xb1   :  { %383 = vmatpush3.xpose.msk.msra.mxu0 %vm18_vm0, %v154_v2 }
  0xb2   :  { %384 = vmatprep.subr.mxu0 %v473_v46  ;;  %445 = vrsqrt.f32 %v111_v53 }
  0xb3   :  { %v434_v45 = vpop.eup %433  ;;  %v290_v63 = vpop.permute.xlu1 %289 }
  0xb4   :  { %v149_v17 = vmul.f32 %v434_v45, %v567_v23  ;;  %v436_v50 = vpop.eup %435 }
  0xb5   :  { %385 = vmatpush3.xpose.msk.msra.mxu0 %vm18_vm0, %v153_v6  ;;  %v148_v22 = vmul.f32 %v436_v50, %v578_v28 }
  0xb6   :  { %386 = vmatprep.subr.mxu0 %v473_v46 }
  0xb7   :  { %v438_v54 = vpop.eup %437 }
  0xb8   :  { %v147_v55 = vmul.f32 %v438_v54, %v583_v29  ;;  %v440_v23 = vpop.eup %439 }
  0xb9   :  { %387 = vmatpush3.xpose.msk.msra.mxu0 %vm18_vm0, %v152_v8  ;;  %v146_v56 = vmul.f32 %v440_v23, %v594_v34 }
  0xba   :  { %388 = vmatprep.subr.mxu0 %v473_v46 }
  0xbb   :  { %v442_v57 = vpop.eup %441 }
  0xbc   :  { %v145_v28 = vmul.f32 %v442_v57, %v599_v35  ;;  %v444_v58 = vpop.eup %443  ;;  %v21_v35 = vpop.xlane.xlu0 %20 }
  0xbd   :  { %389 = vmatpush3.xpose.msk.msra.mxu0 %vm18_vm0, %v151_v9  ;;  %v144_v29 = vmul.f32 %v444_v58, %v610_v40  ;;  %v29_v60 = vmax.f32 %v21_v35, 1e-24  ;;  %v287_v40 = vand.u32 127, %v286_v61  ;;  %vm24_vm8 = vcmp.eq.f32.partialorder %v21_v35, inf }
  0xbe   :  { %390 = vmatprep.subr.mxu0 %v473_v46  ;;  %v27_v32 = vand.u32 2147483648, %v21_v35  ;;  %vm26_vm9 = vcmp.eq.f32.partialorder %v21_v35, 0.0 }
  0xbf   :  { %v446_v59 = vpop.eup %445  ;;  %447 = vrsqrt.f32 %v29_v60  ;;  %vm291_vm2 = vcmp.eq.s32.totalorder %v287_v40, %v290_v63 }
  0xc0   :  { %v143_v34 = vmul.f32 %v446_v59, %v615_v41  ;;  %449 = vrsqrt.f32 %v21_v35 }
  0xc1   :  { %391 = vmatpush3.xpose.msk.msra.mxu0 %vm18_vm0, %v150_v16 }
  0xc2   :  { %392 = vmatprep.subr.mxu0 %v473_v46 }
  0xc5   :  { %393 = vmatpush3.xpose.msk.msra.mxu0 %vm18_vm0, %v149_v17 }
  0xc6   :  { %394 = vmatprep.subr.mxu0 %v473_v46 }
  0xc9   :  { %395 = vmatpush3.xpose.msk.msra.mxu0 %vm18_vm0, %v148_v22 }
  0xca   :  { %396 = vmatprep.subr.mxu0 %v473_v46 }
  0xcc   :  { %v448_v62 = vpop.eup %447 }
  0xcd   :  { %397 = vmatpush3.xpose.msk.msra.mxu0 %vm18_vm0, %v147_v55  ;;  %v450_v26 = vpop.eup %449 }
  0xce   :  { %398 = vmatprep.subr.mxu0 %v473_v46  ;;  %v23_v6 = vmul.f32 %v450_v26, %v21_v35 }
  0xd0   :  { %v25_v8 = vsel %vm24_vm8, %v21_v35, %v23_v6 }
  0xd1   :  { %399 = vmatpush3.xpose.msk.msra.mxu0 %vm18_vm0, %v146_v56  ;;  %v28_v37 = vsel %vm26_vm9, %v27_v32, %v25_v8 }
  0xd2   :  { %400 = vmatprep.subr.mxu0 %v473_v46 }
  0xd5   :  { %401 = vmatpush3.xpose.msk.msra.mxu0 %vm18_vm0, %v145_v28 }
  0xd6   :  { %402 = vmatprep.subr.mxu0 %v473_v46 }
  0xd9   :  { %403 = vmatpush3.xpose.msk.msra.mxu0 %vm18_vm0, %v144_v29 }
  0xda   :  { %404 = vmatprep.subr.mxu0 %v473_v46 }
  0xdd   :  { %405 = vmatpush3.xpose.msk.msra.mxu0 %vm18_vm0, %v143_v34 }
  0xe0   :  { %407 = vmatmul.mubr.msk.f32.vlgmr.msra.gmra.mxu0 %vm18_vm0, %v630_v49 }
 0x1a0   :  { %v276_v3 = vpop.f32.mrf.mxu0 }
 0x1a1   :  { %v280_v4 = vmul.f32 %v448_v62, %v276_v3 }
 0x1a2   :  { %v408_v5 = vpop.f32.mrf.mxu0 }
 0x1a3   :  { %v355_v7 = vclamps-f32 %v280_v4, 1.0 }
 0x1a5   :  { %v292_v41 = vsel %vm291_vm2, %v355_v7, 0.0 }
 0x1a6   :  { %293 = vadd.xlane.f32.xlu0 %v292_v41 }
 0x22f   :  { %v294_v46 = vpop.xlane.xlu0 %293 }
 0x230   :  { %v295_v10 = vmul.f32 %v294_v46, %v294_v46  ;;  %vm300_vm3 = vcmp.le.f32.partialorder %v294_v46, 0.70710677  ;;  %vm302_vm4 = vcmp.le.f32.partialorder %v294_v46, 1.7948966e-09  ;;  %vm305_vm5 = vcmp.le.f32.partialorder %v294_v46, -0.70710677 }
 0x231   :  { %v301_v49 = vsel %vm300_vm3, 1, %v475_v52  ;;  %v303_v11 = vsel %vm302_vm4, 1, %v475_v52  ;;  %vm308_vm6 = vcmp.le.f32.partialorder %v294_v46, -1.0  ;;  %v306_v14 = vsel %vm305_vm5, 1, %v475_v52 }
 0x232   :  { %v296_v12 = vmul.f32 8.0, %v295_v10  ;;  %v304_v13 = vadd.s32 %v303_v11, %v301_v49  ;;  %v309_v19 = vsel %vm308_vm6, 1, %v475_v52 }
 0x234   :  { %v356_v15 = vadd.f32 -8.0, %v296_v12  ;;  %v307_v18 = vadd.s32 %v306_v14, %v304_v13 }
 0x236   :  { %v298_v20 = vmul.f32 %v356_v15, %v295_v10  ;;  %v310_v0 = vadd.s32 %v309_v19, %v307_v18 }
 0x238   :  { %v299_v21 = vadd.f32 1.0, %v298_v20  ;;  %v311_v24 = vand.u32 1, %v310_v0  ;;  %v315_v25 = vcvt.s32.f32 %v310_v0 }
 0x23a   :  { %v313_v1 = vsub.f32 0.0, %v299_v21  ;;  %vm312_vm7 = vcmp.eq.s32.totalorder %v311_v24, 1  ;;  %v316_v2 = vmul.f32 2.0, %v315_v25 }
 0x23c   :  { %v314_v27 = vsel %vm312_vm7, %v313_v1, %v299_v21 }
 0x23d   :  { %v317_v30 = vsub.f32 %v314_v27, %v316_v2 }
 0x23f   :  { %v318_v31 = vsub.f32 %v317_v30, %v294_v46 }
 0x241   :  { %v319_v33 = vmul.f32 0.001118747, %v318_v31 }
 0x243   :  { %v320_v52 = vsel %vm291_vm2, %v319_v33, 0.0 }
 0x244   :  { %v321_v36 = vadd.f32 %v355_v7, %v320_v52 }
 0x246   :  { %v322_v38 = vmul.f32 %v321_v36, %v28_v37 }
 0x248   :  { %323 = vst [vmem:[#allocation2] sm:$0xff] %v322_v38 }
 0x249   :  { %462 = shalt.err (!%p459_p4)
}
 0x24a   :  { %333 = dma.vmem_to_hbm [thread:$0]  %s331_s1, 128, %s701_s3, [#allocation3]  }
 0x24b   :  { %471 = dma.done.wait [#allocation3], 128  }
 0x24c   :  { %472 = vsyncadd [#allocation3], 4294967168 }
 0x24d   :  { %337 = vsyncpa [#allocation3], 1 }

</bundles_post_ra>
